<compile_context>
chip_gen: v7x
topology: tpu7x:2x2x1
jax: 0.10.0
libtpu: 0.0.40
codegen_flags: <defaults>
</compile_context>

<pallas_src>
import functools

import jax
import jax.numpy as jnp
import numpy as np
from jax.experimental import pallas as pl
from jax.experimental.pallas import tpu as pltpu


def _round_up(x, m):
    return ((x + m - 1) // m) * m


# ---------------------------------------------------------------------------
# Prologue: normalize once, fold 1/temperature into the LHS, cast to bf16.
# ---------------------------------------------------------------------------
def _normalize_kernel(b1_ref, b2_ref, o1_ref, o2_ref, *, inv_temperature):
    b1 = b1_ref[...].astype(jnp.float32)
    b2 = b2_ref[...].astype(jnp.float32)
    # F.normalize: x / max(||x||, eps), eps=1e-12  ->  x * rsqrt(max(sumsq, eps^2))
    eps2 = jnp.float32(1e-24)
    inv1 = jax.lax.rsqrt(jnp.maximum(jnp.sum(b1 * b1, axis=-1, keepdims=True), eps2))
    inv2 = jax.lax.rsqrt(jnp.maximum(jnp.sum(b2 * b2, axis=-1, keepdims=True), eps2))
    o1_ref[...] = (b1 * (inv1 * jnp.float32(inv_temperature))).astype(o1_ref.dtype)
    o2_ref[...] = (b2 * inv2).astype(o2_ref.dtype)


def _normalize(b1p, b2p, inv_temperature, out_dtype):
    Bp, Dp = b1p.shape
    TP = min(512, Bp)
    kernel = functools.partial(_normalize_kernel, inv_temperature=inv_temperature)
    return pl.pallas_call(
        kernel,
        out_shape=(
            jax.ShapeDtypeStruct((Bp, Dp), out_dtype),
            jax.ShapeDtypeStruct((Bp, Dp), out_dtype),
        ),
        grid_spec=pltpu.PrefetchScalarGridSpec(
            num_scalar_prefetch=0,
            grid=(Bp // TP,),
            in_specs=[
                pl.BlockSpec((TP, Dp), lambda i: (i, 0)),
                pl.BlockSpec((TP, Dp), lambda i: (i, 0)),
            ],
            out_specs=[
                pl.BlockSpec((TP, Dp), lambda i: (i, 0)),
                pl.BlockSpec((TP, Dp), lambda i: (i, 0)),
            ],
        ),
        compiler_params=pltpu.CompilerParams(
            dimension_semantics=("parallel",),
        ),
    )(b1p, b2p)


# ---------------------------------------------------------------------------
# Main kernel: tiled similarity matmul + streaming logsumexp.
# ---------------------------------------------------------------------------
def _infonce_kernel(b1_ref, b2_ref, *refs,
                    b_valid, tile_m, tile_n, mask_cols, with_sim):
    if with_sim:
        sim_ref, pos_ref, rowloss_ref, m_sc, l_sc, pos_sc = refs
    else:
        pos_ref, rowloss_ref, m_sc, l_sc, pos_sc = refs
        sim_ref = None

    i = pl.program_id(0)
    j = pl.program_id(1)
    nj = pl.num_programs(1)

    # Operands are pre-normalized, pre-temperature-scaled (bf16): just matmul.
    # (TM, D) x (TN, D)^T -> (TM, TN), f32 accumulation on the MXU.
    sim = jax.lax.dot_general(
        b1_ref[...], b2_ref[...], (((1,), (1,)), ((), ())),
        preferred_element_type=jnp.float32,
    )
    if sim_ref is not None:
        sim_ref[...] = sim.astype(sim_ref.dtype)

    @pl.when(j == 0)
    def _init():
        m_sc[...] = jnp.full_like(m_sc, -jnp.inf)
        l_sc[...] = jnp.zeros_like(l_sc)

    # Positive logit of global row i*TM + r is the local diagonal of the
    # j == i block (requires TM == TN).  Select + row-reduce rides the XLU;
    # no extra (TM, D) elementwise dot.
    @pl.when(j == i)
    def _positives():
        row = jax.lax.broadcasted_iota(jnp.int32, (tile_m, tile_n), 0)
        col = jax.lax.broadcasted_iota(jnp.int32, (tile_m, tile_n), 1)
        pos = jnp.sum(jnp.where(row == col, sim, jnp.float32(0.0)),
                      axis=-1, keepdims=True)
        pos_sc[...] = pos
        pos_ref[...] = pos

    if mask_cols:
        col = jax.lax.broadcasted_iota(jnp.int32, (1, tile_n), 1) + j * tile_n
        sim = jnp.where(col < b_valid, sim, jnp.float32(-jnp.inf))

    # Online logsumexp update over the column tiles.
    m_prev = m_sc[...]
    m_new = jnp.maximum(m_prev, jnp.max(sim, axis=-1, keepdims=True))
    alpha = jnp.exp(m_prev - m_new)
    p = jnp.exp(sim - m_new)
    l_sc[...] = alpha * l_sc[...] + jnp.sum(p, axis=-1, keepdims=True)
    m_sc[...] = m_new

    @pl.when(j == nj - 1)
    def _finalize():
        lse = m_sc[...] + jnp.log(l_sc[...])
        rowloss_ref[...] = lse - pos_sc[...]


def infonce(batch1, batch2, temperature, *, tile=None, use_bf16=True,
            return_logits=True):
    """Returns (loss, logits) matching the PyTorch InfoNCE.forward.

    If return_logits=False, the (B, B) similarity matrix is never
    materialized and logits is returned as None (loss-only fast path).
    """
    B, D = batch1.shape
    assert batch2.shape == (B, D)

    # Lane-dense, MXU-friendly padding and tile selection.
    Dp = _round_up(D, 128)
    Bp128 = _round_up(B, 128)
    if tile is None:
        tile = 512 if B >= 1024 else 256
    TM = min(tile, Bp128)
    # v7x megacore: prefer >= 2 row tiles on the "parallel" axis when the
    # batch is big enough (v5e/v6e have 1 TC, so this is harmless there).
    if TM == Bp128 and Bp128 >= 256 and (Bp128 // 2) % 128 == 0:
        TM = Bp128 // 2
    TN = TM
    assert TM == TN, "diagonal-positive extraction assumes square tiles"
    Bp = _round_up(B, TM)

    b1p = jnp.pad(batch1, ((0, Bp - B), (0, Dp - D)))
    b2p = jnp.pad(batch2, ((0, Bp - B), (0, Dp - D)))

    # Prologue: normalize once, fold 1/temperature into the LHS, cast operands.
    op_dtype = jnp.bfloat16 if use_bf16 else jnp.float32
    b1n, b2n = _normalize(b1p, b2p, float(1.0 / temperature), op_dtype)

    sim_dtype = jnp.bfloat16 if use_bf16 else jnp.float32

    kernel = functools.partial(
        _infonce_kernel,
        b_valid=B,
        tile_m=TM,
        tile_n=TN,
        mask_cols=(Bp != B),
        with_sim=return_logits,
    )

    out_shape = []
    out_specs = []
    if return_logits:
        out_shape.append(jax.ShapeDtypeStruct((Bp, Bp), sim_dtype))   # scaled sim
        out_specs.append(pl.BlockSpec((TM, TN), lambda i, j: (i, j)))
    out_shape += [
        jax.ShapeDtypeStruct((Bp, 1), jnp.float32),                   # positive
        jax.ShapeDtypeStruct((Bp, 1), jnp.float32),                   # lse - pos
    ]
    out_specs += [
        pl.BlockSpec((TM, 1), lambda i, j: (i, 0)),
        pl.BlockSpec((TM, 1), lambda i, j: (i, 0)),
    ]

    grid_spec = pltpu.PrefetchScalarGridSpec(
        num_scalar_prefetch=0,
        grid=(Bp // TM, Bp // TN),
        in_specs=[
            pl.BlockSpec((TM, Dp), lambda i, j: (i, 0)),   # LHS: resident over j
            pl.BlockSpec((TN, Dp), lambda i, j: (j, 0)),   # RHS: streamed over j
        ],
        out_specs=out_specs,
        scratch_shapes=[
            pltpu.VMEM((TM, 1), jnp.float32),  # m (running max)
            pltpu.VMEM((TM, 1), jnp.float32),  # l (running sum)
            pltpu.VMEM((TM, 1), jnp.float32),  # pos
        ],
    )

    outs = pl.pallas_call(
        kernel,
        out_shape=tuple(out_shape),
        grid_spec=grid_spec,
        compiler_params=pltpu.CompilerParams(
            dimension_semantics=("parallel", "arbitrary"),
            # bf16 operands keep per-step VMEM small; 32 MiB is safe even on
            # v7x (64 MiB physical / 32 MiB scoped default).
            vmem_limit_bytes=32 * 1024 * 1024,
        ),
    )(b1n, b2n)

    if return_logits:
        sim, pos, row_loss = outs
    else:
        pos, row_loss = outs
        sim = None

    positives = pos[:B].astype(jnp.float32)       # (B, 1), f32 MXU accumulation
    loss = jnp.mean(row_loss[:B, 0])

    if not return_logits:
        return loss, None

    # Reproduce torch.cat([positives, negatives], dim=1) ordering with a cheap
    # elementwise select (no gather): negatives[i, k] = sim[i, k] if k < i
    # else sim[i, k + 1].
    # NOTE: negatives come from the bf16 sim writeback while the positive
    # column is the f32-accumulated diagonal; both are within tolerance.
    sim = sim[:B, :B].astype(jnp.float32)
    if B > 1:
        row = jnp.arange(B, dtype=jnp.int32)[:, None]
        col = jnp.arange(B - 1, dtype=jnp.int32)[None, :]
        negatives = jnp.where(col < row, sim[:, : B - 1], sim[:, 1:])
        logits = jnp.concatenate([positives, negatives], axis=1)
    else:
        logits = positives

    return loss, logits


def _reference(batch1, batch2, temperature):
    """NumPy (f64) reference of the PyTorch forward."""
    b1 = np.asarray(batch1, np.float64)
    b2 = np.asarray(batch2, np.float64)
    eps = 1e-12
    b1 = b1 / np.maximum(np.linalg.norm(b1, axis=1, keepdims=True), eps)
    b2 = b2 / np.maximum(np.linalg.norm(b2, axis=1, keepdims=True), eps)
    sim = (b1 @ b2.T) / temperature
    B = sim.shape[0]
    mask = np.eye(B, dtype=bool)
    pos = sim[mask].reshape(B, 1)
    neg = sim[~mask].reshape(B, B - 1)
    logits = np.concatenate([pos, neg], axis=1)
    m = logits.max(axis=1, keepdims=True)
    lse = np.log(np.exp(logits - m).sum(axis=1)) + m[:, 0]
    loss = (lse - logits[:, 0]).mean()
    return loss, logits


if __name__ == "__main__":
    key = jax.random.PRNGKey(0)
    k1, k2 = jax.random.split(key)
    B, D = 8, 32
    temperature = 0.5

    batch1 = jax.random.normal(k1, (B, D), dtype=jnp.float32)
    batch2 = jax.random.normal(k2, (B, D), dtype=jnp.float32)

    loss, logits = infonce(batch1, batch2, temperature)
    loss = jax.block_until_ready(loss)
    logits = jax.block_until_ready(logits)

    # Loss-only fast path (no sim materialization) must agree with itself.
    loss_only, _ = infonce(batch1, batch2, temperature, return_logits=False)
    loss_only = jax.block_until_ready(loss_only)

    ref_loss, ref_logits = _reference(batch1, batch2, temperature)

    assert logits.shape == (B, B), logits.shape
    # bf16 MXU operands / bf16 sim writeback -> relaxed tolerance vs f64 ref.
    assert np.allclose(np.asarray(loss), ref_loss, atol=5e-2, rtol=5e-2), (
        float(loss), float(ref_loss))
    assert np.allclose(np.asarray(loss_only), ref_loss, atol=5e-2, rtol=5e-2), (
        float(loss_only), float(ref_loss))
    assert np.allclose(np.asarray(logits), ref_logits, atol=5e-2, rtol=5e-2), (
        float(np.max(np.abs(np.asarray(logits) - ref_logits))))

    print("KERNEL_OK")
</pallas_src>

<mosaic_0001>
module attributes {stable_mosaic.version = 11 : i64} {
  func.func @_normalize_kernel(%arg0: i32, %arg1: memref<128x128xf32, #tpu.memory_space<vmem>>, %arg2: memref<128x128xf32, #tpu.memory_space<vmem>>, %arg3: memref<128x128xbf16, #tpu.memory_space<vmem>>, %arg4: memref<128x128xbf16, #tpu.memory_space<vmem>>) attributes {dimension_semantics = [#tpu.dimension_semantics<parallel>], iteration_bounds = array<i64: 1>, scalar_prefetch = 0 : i64, scratch_operands = 0 : i64, tpu.core_type = #tpu.core_type<tc>, window_params = [{transform_indices = @transform_0, window_bounds = array<i64: 128, 128>}, {transform_indices = @transform_1, window_bounds = array<i64: 128, 128>}, {transform_indices = @transform_2, window_bounds = array<i64: 128, 128>}, {transform_indices = @transform_3, window_bounds = array<i64: 128, 128>}]} {
    %c0 = arith.constant 0 : index
    %c0_0 = arith.constant 0 : index
    %0 = vector.load %arg1[%c0, %c0_0] : memref<128x128xf32, #tpu.memory_space<vmem>>, vector<128x128xf32>
    %c0_1 = arith.constant 0 : index
    %c0_2 = arith.constant 0 : index
    %1 = vector.load %arg2[%c0_1, %c0_2] : memref<128x128xf32, #tpu.memory_space<vmem>>, vector<128x128xf32>
    %2 = arith.mulf %0, %0 : vector<128x128xf32>
    %cst = arith.constant dense<0.000000e+00> : vector<128xf32>
    %3 = vector.multi_reduction <add>, %2, %cst [1] : vector<128x128xf32> to vector<128xf32>
    %4 = vector.shape_cast %3 : vector<128xf32> to vector<128x1xf32>
    %cst_3 = arith.constant 1.000000e-24 : f32
    %5 = vector.broadcast %cst_3 : f32 to vector<128x1xf32>
    %6 = arith.maximumf %4, %5 : vector<128x1xf32>
    %7 = math.rsqrt %6 : vector<128x1xf32>
    %8 = arith.mulf %1, %1 : vector<128x128xf32>
    %cst_4 = arith.constant dense<0.000000e+00> : vector<128xf32>
    %9 = vector.multi_reduction <add>, %8, %cst_4 [1] : vector<128x128xf32> to vector<128xf32>
    %10 = vector.shape_cast %9 : vector<128xf32> to vector<128x1xf32>
    %cst_5 = arith.constant 1.000000e-24 : f32
    %11 = vector.broadcast %cst_5 : f32 to vector<128x1xf32>
    %12 = arith.maximumf %10, %11 : vector<128x1xf32>
    %13 = math.rsqrt %12 : vector<128x1xf32>
    %cst_6 = arith.constant 2.000000e+00 : f32
    %14 = vector.broadcast %cst_6 : f32 to vector<128x1xf32>
    %15 = arith.mulf %7, %14 : vector<128x1xf32>
    %16 = vector.broadcast %15 : vector<128x1xf32> to vector<128x128xf32>
    %17 = arith.mulf %0, %16 : vector<128x128xf32>
    %18 = arith.truncf %17 : vector<128x128xf32> to vector<128x128xbf16>
    %c0_7 = arith.constant 0 : index
    %c0_8 = arith.constant 0 : index
    %19 = vector.load %arg3[%c0_7, %c0_8] : memref<128x128xbf16, #tpu.memory_space<vmem>>, vector<128x128xbf16>
    tpu.vector_store %arg3[%c0_7, %c0_8], %18 {strides = array<i32>} : memref<128x128xbf16, #tpu.memory_space<vmem>>, vector<128x128xbf16>,
    %20 = vector.broadcast %13 : vector<128x1xf32> to vector<128x128xf32>
    %21 = arith.mulf %1, %20 : vector<128x128xf32>
    %22 = arith.truncf %21 : vector<128x128xf32> to vector<128x128xbf16>
    %c0_9 = arith.constant 0 : index
    %c0_10 = arith.constant 0 : index
    %23 = vector.load %arg4[%c0_9, %c0_10] : memref<128x128xbf16, #tpu.memory_space<vmem>>, vector<128x128xbf16>
    tpu.vector_store %arg4[%c0_9, %c0_10], %22 {strides = array<i32>} : memref<128x128xbf16, #tpu.memory_space<vmem>>, vector<128x128xbf16>,
    return
  }
  func.func @transform_0(%arg0: i32) -> (i32, i32) {
    %c0_i32 = arith.constant 0 : i32
    %c0_i32_0 = arith.constant 0 : i32
    return %arg0, %c0_i32 : i32, i32
  }
  func.func @transform_1(%arg0: i32) -> (i32, i32) {
    %c0_i32 = arith.constant 0 : i32
    %c0_i32_0 = arith.constant 0 : i32
    return %arg0, %c0_i32 : i32, i32
  }
  func.func @transform_2(%arg0: i32) -> (i32, i32) {
    %c0_i32 = arith.constant 0 : i32
    %c0_i32_0 = arith.constant 0 : i32
    return %arg0, %c0_i32 : i32, i32
  }
  func.func @transform_3(%arg0: i32) -> (i32, i32) {
    %c0_i32 = arith.constant 0 : i32
    %c0_i32_0 = arith.constant 0 : i32
    return %arg0, %c0_i32 : i32, i32
  }
}

</mosaic_0001>

<bundles_post_ra>
// kernel: tpu_custom_call.1
= control target key start
LH: loop header
LB: loop body
LE: loop exit
PB: predicated region body
PF: predicated region fallthrough
CT: control target
= control target key end

     0   :  { %9 = vsyncpa [#allocation3], 0  ;;  %s1052_s0 = inlined_call_operand.hbm [shape: f32[128,128], index: 0, kind: input, shape index: {}]   ;;  %s1053_s1 = inlined_call_operand.hbm [shape: f32[128,128], index: 1, kind: input, shape index: {}]   ;;  %s1054_s2 = inlined_call_operand.hbm [shape: bf16[128,128], index: 2, kind: output, shape index: {0}]   ;;  %s1055_s3 = inlined_call_operand.hbm [shape: bf16[128,128], index: 3, kind: output, shape index: {1}]  }
   0x1   :  { %10 = vsyncpa [#allocation6], 0 }
   0x2   :  { %11 = vsyncpa [#allocation4], 0 }
   0x3   :  { %12 = vsyncpa [#allocation9], 0  ;;  %s803_s12 = smov [#allocation2]   ;;  %s707_s16 = scalar_lea.hbm %s1052_s0, 2048 }
   0x4   :  { %s18_s13 = sshll.u32 %s803_s12, 4  ;;  %p708_p0 = scmp.ne.s32.totalorder %s1052_s0, %s707_s16  ;;  %s19_s13 = int_to_ptr.vmem [resolvable:$true] %s18_s13 }
   0x5   :  { %p711_p1 = scmp.lt.u32.totalorder %s707_s16, %s1052_s0 }
   0x7   :  { %p713_p2 = pnand %p711_p1, %p708_p0 }
   0x9   :  { %716 = shalt.err (!%p713_p2)
}
   0xa   :  { %s717_s21 = scalar_lea.vmem %s19_s13, 2048  ;;  %p722_p4 = scmp.lt.s32.totalorder %s19_s13, %s19_s13 }
   0xb   :  { %p718_p3 = scmp.ne.s32.totalorder %s19_s13, %s717_s21  ;;  %p723_p5 = scmp.lt.s32.totalorder %s717_s21, %s717_s21 }
   0xd   :  { %p724_p6 = por %p723_p5, %p722_p4 }
   0xf   :  { %p725_p7 = pnand %p724_p6, %p718_p3 }
  0x11   :  { %728 = shalt.err (!%p725_p7)
}
  0x12   :  { %s804_s22 = smov 128   ;;  %s805_s23 = smov 8  }
  0x13   :  { %24 = dma.hbm_to_vmem [thread:$0]  %s1052_s0, 2048, %s19_s13, [#allocation3], %s804_s22, %s804_s22, %s805_s23  }
  0x14   :  { %s806_s26 = smov [#allocation5]   ;;  %s729_s30 = scalar_lea.hbm %s1053_s1, 2048 }
  0x15   :  { %s30_s27 = sshll.u32 %s806_s26, 4  ;;  %p730_p8 = scmp.ne.s32.totalorder %s1053_s1, %s729_s30  ;;  %s31_s27 = int_to_ptr.vmem [resolvable:$true] %s30_s27 }
  0x16   :  { %p733_p9 = scmp.lt.u32.totalorder %s729_s30, %s1053_s1 }
  0x18   :  { %p735_p10 = pnand %p733_p9, %p730_p8 }
  0x1a   :  { %738 = shalt.err (!%p735_p10)
}
  0x1b   :  { %s739_s8 = scalar_lea.vmem %s31_s27, 2048  ;;  %p744_p12 = scmp.lt.s32.totalorder %s31_s27, %s31_s27 }
  0x1c   :  { %p740_p11 = scmp.ne.s32.totalorder %s31_s27, %s739_s8  ;;  %p745_p13 = scmp.lt.s32.totalorder %s739_s8, %s739_s8 }
  0x1e   :  { %p746_p0 = por %p745_p13, %p744_p12 }
  0x20   :  { %p747_p1 = pnand %p746_p0, %p740_p11 }
  0x22   :  { %750 = shalt.err (!%p747_p1)
}
  0x23   :  { %36 = dma.hbm_to_vmem [thread:$0]  %s1053_s1, 2048, %s31_s27, [#allocation6], %s804_s22, %s804_s22, %s805_s23  }
  0x24   :  { %795 = dma.done.wait [#allocation3], 2048  }
  0x25   :  { %796 = vsyncadd [#allocation3], 4294965248 }
  0x26   :  { %797 = dma.done.wait [#allocation6], 2048  }
  0x27   :  { %798 = vsyncadd [#allocation6], 4294965248  ;;  %v855_v0 = vld [vmem:[#allocation2 + $0x10] sm:$0xff]  ;;  %v857_v1 = vld [vmem:[#allocation2] sm:$0xff]  ;;  %s807_s1 = smov [#allocation7]  }
  0x28   :  { %v859_v2 = vld [vmem:[#allocation2 + $0x18] sm:$0xff]  ;;  %v77_v3 = vmul.f32 %v855_v0, %v855_v0  ;;  %v75_v4 = vmul.f32 %v857_v1, %v857_v1  ;;  %v865_v5 = vld [vmem:[#allocation2 + $0x8] sm:$0xff]  ;;  %v873_v9 = vld [vmem:[#allocation2 + $0x20] sm:$0xff]  ;;  %s448_s10 = sshll.u32 %s807_s1, 4  ;;  %s1000_s10 = int_to_ptr.vmem [resolvable:$true] %s448_s10 }
  0x29   :  { %v78_v6 = vmul.f32 %v859_v2, %v859_v2  ;;  %v76_v7 = vmul.f32 %v865_v5, %v865_v5  ;;  %v871_v8 = vld [vmem:[#allocation2 + $0x28] sm:$0xff]  ;;  %v79_v11 = vmul.f32 %v873_v9, %v873_v9  ;;  %v879_v12 = vld [vmem:[#allocation2 + $0x38] sm:$0xff]  ;;  %v881_v13 = vld [vmem:[#allocation2 + $0x30] sm:$0xff]  ;;  %s751_s11 = scalar_lea.vmem %s1000_s10, 1024  ;;  %p756_p3 = scmp.lt.s32.totalorder %s1000_s10, %s1000_s10 }
  0x2a   :  { %95 = vadd.xlane.f32.xlu1 %v77_v3  ;;  %91 = vadd.xlane.f32.xlu0 %v75_v4  ;;  %v80_v10 = vmul.f32 %v871_v8, %v871_v8  ;;  %v82_v14 = vmul.f32 %v879_v12, %v879_v12  ;;  %v81_v15 = vmul.f32 %v881_v13, %v881_v13  ;;  %v887_v16 = vld [vmem:[#allocation2 + $0x48] sm:$0xff]  ;;  %v889_v17 = vld [vmem:[#allocation2 + $0x40] sm:$0xff]  ;;  %v895_v20 = vld [vmem:[#allocation2 + $0x58] sm:$0xff]  ;;  %p752_p2 = scmp.ne.s32.totalorder %s1000_s10, %s751_s11  ;;  %p757_p4 = scmp.lt.s32.totalorder %s751_s11, %s751_s11 }
  0x2b   :  { %v84_v18 = vmul.f32 %v887_v16, %v887_v16  ;;  %v83_v19 = vmul.f32 %v889_v17, %v889_v17  ;;  %v897_v21 = vld [vmem:[#allocation2 + $0x50] sm:$0xff]  ;;  %v86_v22 = vmul.f32 %v895_v20, %v895_v20  ;;  %v903_v24 = vld [vmem:[#allocation2 + $0x68] sm:$0xff]  ;;  %v905_v25 = vld [vmem:[#allocation2 + $0x60] sm:$0xff] }
  0x2c   :  { %v85_v23 = vmul.f32 %v897_v21, %v897_v21  ;;  %v88_v26 = vmul.f32 %v903_v24, %v903_v24  ;;  %v87_v27 = vmul.f32 %v905_v25, %v905_v25  ;;  %v911_v28 = vld [vmem:[#allocation2 + $0x78] sm:$0xff]  ;;  %v913_v29 = vld [vmem:[#allocation2 + $0x70] sm:$0xff]  ;;  %v919_v32 = vld [vmem:[#allocation5 + $0x8] sm:$0xff]  ;;  %p758_p5 = por %p757_p4, %p756_p3 }
  0x2d   :  { %v90_v30 = vmul.f32 %v911_v28, %v911_v28  ;;  %v89_v31 = vmul.f32 %v913_v29, %v913_v29  ;;  %v921_v33 = vld [vmem:[#allocation5] sm:$0xff]  ;;  %v156_v34 = vmul.f32 %v919_v32, %v919_v32  ;;  %v927_v36 = vld [vmem:[#allocation5 + $0x18] sm:$0xff]  ;;  %v929_v37 = vld [vmem:[#allocation5 + $0x10] sm:$0xff] }
  0x2e   :  { %97 = vadd.xlane.f32.xlu1 %v78_v6  ;;  %93 = vadd.xlane.f32.xlu0 %v76_v7  ;;  %v155_v35 = vmul.f32 %v921_v33, %v921_v33  ;;  %v158_v38 = vmul.f32 %v927_v36, %v927_v36  ;;  %v157_v39 = vmul.f32 %v929_v37, %v929_v37  ;;  %v935_v40 = vld [vmem:[#allocation5 + $0x28] sm:$0xff]  ;;  %v937_v41 = vld [vmem:[#allocation5 + $0x20] sm:$0xff]  ;;  %v943_v44 = vld [vmem:[#allocation5 + $0x38] sm:$0xff]  ;;  %p759_p6 = pnand %p758_p5, %p752_p2 }
  0x2f   :  { %v160_v42 = vmul.f32 %v935_v40, %v935_v40  ;;  %v159_v43 = vmul.f32 %v937_v41, %v937_v41  ;;  %v945_v45 = vld [vmem:[#allocation5 + $0x30] sm:$0xff]  ;;  %v162_v46 = vmul.f32 %v943_v44, %v943_v44  ;;  %v951_v48 = vld [vmem:[#allocation5 + $0x48] sm:$0xff]  ;;  %v953_v49 = vld [vmem:[#allocation5 + $0x40] sm:$0xff] }
  0x30   :  { %v161_v47 = vmul.f32 %v945_v45, %v945_v45  ;;  %v164_v50 = vmul.f32 %v951_v48, %v951_v48  ;;  %v163_v51 = vmul.f32 %v953_v49, %v953_v49  ;;  %v959_v52 = vld [vmem:[#allocation5 + $0x58] sm:$0xff]  ;;  %v961_v53 = vld [vmem:[#allocation5 + $0x50] sm:$0xff]  ;;  %v967_v56 = vld [vmem:[#allocation5 + $0x68] sm:$0xff] }
  0x31   :  { %v166_v54 = vmul.f32 %v959_v52, %v959_v52  ;;  %v165_v55 = vmul.f32 %v961_v53, %v961_v53  ;;  %v969_v57 = vld [vmem:[#allocation5 + $0x60] sm:$0xff]  ;;  %v168_v58 = vmul.f32 %v967_v56, %v967_v56  ;;  %v975_v60 = vld [vmem:[#allocation5 + $0x78] sm:$0xff]  ;;  %v977_v61 = vld [vmem:[#allocation5 + $0x70] sm:$0xff] }
  0x32   :  { %101 = vadd.xlane.f32.xlu1 %v80_v10  ;;  %99 = vadd.xlane.f32.xlu0 %v79_v11  ;;  %v167_v59 = vmul.f32 %v969_v57, %v969_v57  ;;  %v170_v62 = vmul.f32 %v975_v60, %v975_v60  ;;  %v169_v63 = vmul.f32 %v977_v61, %v977_v61 }
  0x36   :  { %105 = vadd.xlane.f32.xlu1 %v82_v14  ;;  %103 = vadd.xlane.f32.xlu0 %v81_v15 }
  0x3a   :  { %109 = vadd.xlane.f32.xlu1 %v84_v18  ;;  %107 = vadd.xlane.f32.xlu0 %v83_v19 }
  0x3e   :  { %113 = vadd.xlane.f32.xlu1 %v86_v22  ;;  %111 = vadd.xlane.f32.xlu0 %v85_v23 }
  0x42   :  { %117 = vadd.xlane.f32.xlu1 %v88_v26  ;;  %115 = vadd.xlane.f32.xlu0 %v87_v27 }
  0x46   :  { %121 = vadd.xlane.f32.xlu1 %v90_v30  ;;  %119 = vadd.xlane.f32.xlu0 %v89_v31 }
  0x4a   :  { %173 = vadd.xlane.f32.xlu1 %v156_v34  ;;  %171 = vadd.xlane.f32.xlu0 %v155_v35 }
  0x4e   :  { %177 = vadd.xlane.f32.xlu1 %v158_v38  ;;  %175 = vadd.xlane.f32.xlu0 %v157_v39 }
  0x52   :  { %181 = vadd.xlane.f32.xlu1 %v160_v42  ;;  %179 = vadd.xlane.f32.xlu0 %v159_v43 }
  0x56   :  { %185 = vadd.xlane.f32.xlu1 %v162_v46  ;;  %183 = vadd.xlane.f32.xlu0 %v161_v47 }
  0x5a   :  { %189 = vadd.xlane.f32.xlu1 %v164_v50  ;;  %187 = vadd.xlane.f32.xlu0 %v163_v51 }
  0x5e   :  { %193 = vadd.xlane.f32.xlu1 %v166_v54  ;;  %191 = vadd.xlane.f32.xlu0 %v165_v55 }
  0x62   :  { %197 = vadd.xlane.f32.xlu1 %v168_v58  ;;  %195 = vadd.xlane.f32.xlu0 %v167_v59 }
  0x66   :  { %201 = vadd.xlane.f32.xlu1 %v170_v62  ;;  %199 = vadd.xlane.f32.xlu0 %v169_v63 }
  0xb7   :  { %v96_v3 = vpop.xlane.xlu1 %95  ;;  %v92_v4 = vpop.xlane.xlu0 %91 }
  0xb8   :  { %v125_v6 = vmax.f32 %v96_v3, 1e-24  ;;  %v123_v7 = vmax.f32 %v92_v4, 1e-24 }
  0xba   :  { %643 = vrsqrt.f32 %v125_v6 }
  0xbb   :  { %645 = vrsqrt.f32 %v123_v7  ;;  %v98_v10 = vpop.xlane.xlu1 %97  ;;  %v94_v11 = vpop.xlane.xlu0 %93 }
  0xbc   :  { %v126_v14 = vmax.f32 %v98_v10, 1e-24  ;;  %v124_v15 = vmax.f32 %v94_v11, 1e-24 }
  0xbe   :  { %647 = vrsqrt.f32 %v126_v14 }
  0xbf   :  { %649 = vrsqrt.f32 %v124_v15  ;;  %v102_v18 = vpop.xlane.xlu1 %101  ;;  %v100_v19 = vpop.xlane.xlu0 %99 }
  0xc0   :  { %v128_v22 = vmax.f32 %v102_v18, 1e-24  ;;  %v127_v23 = vmax.f32 %v100_v19, 1e-24 }
  0xc2   :  { %651 = vrsqrt.f32 %v128_v22 }
  0xc3   :  { %653 = vrsqrt.f32 %v127_v23  ;;  %v106_v26 = vpop.xlane.xlu1 %105  ;;  %v104_v27 = vpop.xlane.xlu0 %103 }
  0xc4   :  { %v644_v30 = vpop.eup %643  ;;  %v130_v31 = vmax.f32 %v106_v26, 1e-24  ;;  %v129_v34 = vmax.f32 %v104_v27, 1e-24 }
  0xc5   :  { %v646_v35 = vpop.eup %645  ;;  %v237_v38 = vmul.f32 2.0, %v644_v30 }
  0xc6   :  { %655 = vrsqrt.f32 %v130_v31  ;;  %v235_v46 = vmul.f32 2.0, %v646_v35 }
  0xc7   :  { %657 = vrsqrt.f32 %v129_v34  ;;  %v110_v39 = vpop.xlane.xlu1 %109  ;;  %v108_v42 = vpop.xlane.xlu0 %107  ;;  %v253_v58 = vmul.f32 %v237_v38, %v855_v0 }
  0xc8   :  { %v648_v43 = vpop.eup %647  ;;  %v132_v47 = vmax.f32 %v110_v39, 1e-24  ;;  %v131_v50 = vmax.f32 %v108_v42, 1e-24  ;;  %v251_v4 = vmul.f32 %v235_v46, %v857_v1 }
  0xc9   :  { %v650_v51 = vpop.eup %649  ;;  %v238_v54 = vmul.f32 2.0, %v648_v43 }
  0xca   :  { %v236_v55 = vmul.f32 2.0, %v650_v51  ;;  %659 = vrsqrt.f32 %v132_v47 }
  0xcb   :  { %v254_v59 = vmul.f32 %v238_v54, %v859_v2  ;;  %661 = vrsqrt.f32 %v131_v50  ;;  %v114_v62 = vpop.xlane.xlu1 %113  ;;  %v112_v63 = vpop.xlane.xlu0 %111 }
  0xcc   :  { %v652_v3 = vpop.eup %651  ;;  %v252_v6 = vmul.f32 %v236_v55, %v865_v5  ;;  %v134_v7 = vmax.f32 %v114_v62, 1e-24  ;;  %v133_v10 = vmax.f32 %v112_v63, 1e-24 }
  0xcd   :  { %v654_v11 = vpop.eup %653  ;;  %v549_v14 = vpack.c.bf16 %v254_v59, %v253_v58  ;;  %v240_v15 = vmul.f32 2.0, %v652_v3 }
  0xce   :  { %v544_v18 = vpack.c.bf16 %v252_v6, %v251_v4  ;;  %v239_v19 = vmul.f32 2.0, %v654_v11  ;;  %663 = vrsqrt.f32 %v134_v7 }
  0xcf   :  { %621 = vst [vmem:[#allocation7 + $0x8] sm:$0xff] %v549_v14   ;;  %v256_v0 = vmul.f32 %v240_v15, %v871_v8  ;;  %665 = vrsqrt.f32 %v133_v10  ;;  %v118_v2 = vpop.xlane.xlu1 %117  ;;  %v116_v22 = vpop.xlane.xlu0 %115 }
  0xd0   :  { %v656_v23 = vpop.eup %655  ;;  %545 = vst [vmem:[#allocation7] sm:$0xff] %v544_v18   ;;  %v255_v1 = vmul.f32 %v239_v19, %v873_v9  ;;  %v136_v26 = vmax.f32 %v118_v2, 1e-24  ;;  %v135_v5 = vmax.f32 %v116_v22, 1e-24 }
  0xd1   :  { %v658_v27 = vpop.eup %657  ;;  %v242_v30 = vmul.f32 2.0, %v656_v23 }
  0xd2   :  { %v554_v31 = vpack.c.bf16 %v256_v0, %v255_v1  ;;  %v241_v34 = vmul.f32 2.0, %v658_v27  ;;  %667 = vrsqrt.f32 %v136_v26 }
  0xd3   :  { %v258_v35 = vmul.f32 %v242_v30, %v879_v12  ;;  %669 = vrsqrt.f32 %v135_v5  ;;  %v122_v38 = vpop.xlane.xlu1 %121  ;;  %v120_v39 = vpop.xlane.xlu0 %119 }
  0xd4   :  { %v660_v8 = vpop.eup %659  ;;  %622 = vst [vmem:[#allocation7 + $0x10] sm:$0xff] %v554_v31   ;;  %v257_v42 = vmul.f32 %v241_v34, %v881_v13  ;;  %v138_v43 = vmax.f32 %v122_v38, 1e-24  ;;  %v137_v46 = vmax.f32 %v120_v39, 1e-24 }
  0xd5   :  { %v662_v47 = vpop.eup %661  ;;  %v244_v9 = vmul.f32 2.0, %v660_v8 }
  0xd6   :  { %v559_v50 = vpack.c.bf16 %v258_v35, %v257_v42  ;;  %v243_v51 = vmul.f32 2.0, %v662_v47  ;;  %671 = vrsqrt.f32 %v138_v43 }
  0xd7   :  { %v260_v54 = vmul.f32 %v244_v9, %v887_v16  ;;  %673 = vrsqrt.f32 %v137_v46  ;;  %v174_v55 = vpop.xlane.xlu1 %173  ;;  %v172_v58 = vpop.xlane.xlu0 %171 }
  0xd8   :  { %v664_v12 = vpop.eup %663  ;;  %623 = vst [vmem:[#allocation7 + $0x18] sm:$0xff] %v559_v50   ;;  %v259_v59 = vmul.f32 %v243_v51, %v889_v17  ;;  %v204_v62 = vmax.f32 %v174_v55, 1e-24  ;;  %v203_v63 = vmax.f32 %v172_v58, 1e-24 }
  0xd9   :  { %v666_v3 = vpop.eup %665  ;;  %v246_v13 = vmul.f32 2.0, %v664_v12 }
  0xda   :  { %v564_v4 = vpack.c.bf16 %v260_v54, %v259_v59  ;;  %v245_v6 = vmul.f32 2.0, %v666_v3  ;;  %675 = vrsqrt.f32 %v204_v62 }
  0xdb   :  { %v262_v7 = vmul.f32 %v246_v13, %v895_v20  ;;  %677 = vrsqrt.f32 %v203_v63  ;;  %v178_v10 = vpop.xlane.xlu1 %177  ;;  %v176_v11 = vpop.xlane.xlu0 %175 }
  0xdc   :  { %v668_v16 = vpop.eup %667  ;;  %624 = vst [vmem:[#allocation7 + $0x20] sm:$0xff] %v564_v4   ;;  %v261_v14 = vmul.f32 %v245_v6, %v897_v21  ;;  %v206_v15 = vmax.f32 %v178_v10, 1e-24  ;;  %v205_v18 = vmax.f32 %v176_v11, 1e-24 }
  0xdd   :  { %v670_v19 = vpop.eup %669  ;;  %v248_v17 = vmul.f32 2.0, %v668_v16 }
  0xde   :  { %v569_v0 = vpack.c.bf16 %v262_v7, %v261_v14  ;;  %v247_v2 = vmul.f32 2.0, %v670_v19  ;;  %679 = vrsqrt.f32 %v206_v15 }
  0xdf   :  { %v264_v22 = vmul.f32 %v248_v17, %v903_v24  ;;  %681 = vrsqrt.f32 %v205_v18  ;;  %v182_v23 = vpop.xlane.xlu1 %181  ;;  %v180_v1 = vpop.xlane.xlu0 %179 }
  0xe0   :  { %v672_v20 = vpop.eup %671  ;;  %625 = vst [vmem:[#allocation7 + $0x28] sm:$0xff] %v569_v0   ;;  %v263_v26 = vmul.f32 %v247_v2, %v905_v25  ;;  %v208_v5 = vmax.f32 %v182_v23, 1e-24  ;;  %v207_v27 = vmax.f32 %v180_v1, 1e-24 }
  0xe1   :  { %v674_v30 = vpop.eup %673  ;;  %v250_v21 = vmul.f32 2.0, %v672_v20 }
  0xe2   :  { %v574_v31 = vpack.c.bf16 %v264_v22, %v263_v26  ;;  %v249_v34 = vmul.f32 2.0, %v674_v30  ;;  %683 = vrsqrt.f32 %v208_v5 }
  0xe3   :  { %v266_v35 = vmul.f32 %v250_v21, %v911_v28  ;;  %685 = vrsqrt.f32 %v207_v27  ;;  %v186_v24 = vpop.xlane.xlu1 %185  ;;  %v184_v38 = vpop.xlane.xlu0 %183 }
  0xe4   :  { %v676_v39 = vpop.eup %675  ;;  %626 = vst [vmem:[#allocation7 + $0x30] sm:$0xff] %v574_v31   ;;  %v265_v8 = vmul.f32 %v249_v34, %v913_v29  ;;  %v210_v42 = vmax.f32 %v186_v24, 1e-24  ;;  %v209_v25 = vmax.f32 %v184_v38, 1e-24 }
  0xe5   :  { %v678_v43 = vpop.eup %677  ;;  %v348_v46 = vmul.f32 %v676_v39, %v919_v32 }
  0xe6   :  { %v579_v47 = vpack.c.bf16 %v266_v35, %v265_v8  ;;  %v347_v28 = vmul.f32 %v678_v43, %v921_v33  ;;  %687 = vrsqrt.f32 %v210_v42 }
  0xe7   :  { %689 = vrsqrt.f32 %v209_v25  ;;  %v190_v9 = vpop.xlane.xlu1 %189  ;;  %v188_v50 = vpop.xlane.xlu0 %187 }
  0xe8   :  { %v680_v51 = vpop.eup %679  ;;  %627 = vst [vmem:[#allocation7 + $0x38] sm:$0xff] %v579_v47   ;;  %v584_v29 = vpack.c.bf16 %v348_v46, %v347_v28  ;;  %v212_v54 = vmax.f32 %v190_v9, 1e-24  ;;  %v211_v55 = vmax.f32 %v188_v50, 1e-24 }
  0xe9   :  { %v682_v58 = vpop.eup %681  ;;  %v350_v32 = vmul.f32 %v680_v51, %v927_v36 }
  0xea   :  { %762 = shalt.err (!%p759_p6)
}
  0xeb   :  { %s763_s14 = scalar_lea.hbm %s1054_s2, 1024 }
  0xec   :  { %p764_p7 = scmp.ne.s32.totalorder %s1054_s2, %s763_s14  ;;  %p767_p8 = scmp.lt.u32.totalorder %s763_s14, %s1054_s2 }
  0xee   :  { %p769_p9 = pnand %p767_p8, %p764_p7 }
  0xf0   :  { %772 = shalt.err (!%p769_p9)
}
  0xf1   :  { %s808_s19 = smov 64   ;;  %s809_s20 = smov 4   ;;  %585 = vst [vmem:[#allocation8] sm:$0xff] %v584_v29   ;;  %v349_v33 = vmul.f32 %v682_v58, %v929_v37  ;;  %691 = vrsqrt.f32 %v212_v54  ;;  %v194_v36 = vpop.xlane.xlu1 %193  ;;  %v192_v12 = vpop.xlane.xlu0 %191 }
  0xf2   :  { %454 = dma.vmem_to_hbm [thread:$0]  %s1000_s10, 1024, %s1054_s2, [#allocation4], %s808_s19, %s808_s19, %s809_s20   ;;  %693 = vrsqrt.f32 %v211_v55  ;;  %v684_v59 = vpop.eup %683  ;;  %v214_v63 = vmax.f32 %v194_v36, 1e-24  ;;  %v213_v3 = vmax.f32 %v192_v12, 1e-24 }
  0xf3   :  { %v589_v62 = vpack.c.bf16 %v350_v32, %v349_v33  ;;  %v686_v13 = vpop.eup %685  ;;  %v352_v4 = vmul.f32 %v684_v59, %v935_v40  ;;  %s810_s2 = smov [#allocation8]  }
  0xf4   :  { %v351_v6 = vmul.f32 %v686_v13, %v937_v41  ;;  %695 = vrsqrt.f32 %v214_v63  ;;  %v688_v11 = vpop.eup %687  ;;  %s460_s23 = sshll.u32 %s810_s2, 4  ;;  %s461_s23 = int_to_ptr.vmem [resolvable:$true] %s460_s23 }
  0xf5   :  { %628 = vst [vmem:[#allocation8 + $0x8] sm:$0xff] %v589_v62   ;;  %697 = vrsqrt.f32 %v213_v3  ;;  %v198_v7 = vpop.xlane.xlu1 %197  ;;  %v196_v10 = vpop.xlane.xlu0 %195  ;;  %v354_v18 = vmul.f32 %v688_v11, %v943_v44  ;;  %s773_s24 = scalar_lea.vmem %s461_s23, 1024  ;;  %p778_p11 = scmp.lt.s32.totalorder %s461_s23, %s461_s23 }
  0xf6   :  { %v594_v37 = vpack.c.bf16 %v352_v4, %v351_v6  ;;  %v216_v16 = vmax.f32 %v198_v7, 1e-24  ;;  %v215_v14 = vmax.f32 %v196_v10, 1e-24  ;;  %v690_v15 = vpop.eup %689  ;;  %p774_p10 = scmp.ne.s32.totalorder %s461_s23, %s773_s24  ;;  %p779_p12 = scmp.lt.s32.totalorder %s773_s24, %s773_s24 }
  0xf7   :  { %v353_v19 = vmul.f32 %v690_v15, %v945_v45 }
  0xf8   :  { %629 = vst [vmem:[#allocation8 + $0x10] sm:$0xff] %v594_v37   ;;  %699 = vrsqrt.f32 %v216_v16  ;;  %p780_p13 = por %p779_p12, %p778_p11 }
  0xf9   :  { %701 = vrsqrt.f32 %v215_v14  ;;  %v202_v40 = vpop.xlane.xlu1 %201  ;;  %v200_v17 = vpop.xlane.xlu0 %199  ;;  %v599_v41 = vpack.c.bf16 %v354_v18, %v353_v19 }
  0xfa   :  { %v218_v2 = vmax.f32 %v202_v40, 1e-24  ;;  %v217_v22 = vmax.f32 %v200_v17, 1e-24  ;;  %p781_p0 = pnand %p780_p13, %p774_p10 }
  0xfb   :  { %v692_v0 = vpop.eup %691  ;;  %630 = vst [vmem:[#allocation8 + $0x18] sm:$0xff] %v599_v41  }
  0xfc   :  { %v694_v23 = vpop.eup %693  ;;  %v356_v1 = vmul.f32 %v692_v0, %v951_v48  ;;  %703 = vrsqrt.f32 %v218_v2 }
  0xfd   :  { %v355_v20 = vmul.f32 %v694_v23, %v953_v49  ;;  %705 = vrsqrt.f32 %v217_v22 }
  0xfe   :  { %v696_v44 = vpop.eup %695 }
  0xff   :  { %v604_v26 = vpack.c.bf16 %v356_v1, %v355_v20  ;;  %v698_v5 = vpop.eup %697  ;;  %v358_v45 = vmul.f32 %v696_v44, %v959_v52 }
 0x100   :  { %v357_v27 = vmul.f32 %v698_v5, %v961_v53 }
 0x101   :  { %631 = vst [vmem:[#allocation8 + $0x20] sm:$0xff] %v604_v26  }
 0x102   :  { %v700_v30 = vpop.eup %699  ;;  %v609_v21 = vpack.c.bf16 %v358_v45, %v357_v27 }
 0x103   :  { %v702_v31 = vpop.eup %701  ;;  %v360_v34 = vmul.f32 %v700_v30, %v967_v56 }
 0x104   :  { %632 = vst [vmem:[#allocation8 + $0x28] sm:$0xff] %v609_v21   ;;  %v359_v48 = vmul.f32 %v702_v31, %v969_v57 }
 0x106   :  { %v704_v35 = vpop.eup %703  ;;  %v614_v49 = vpack.c.bf16 %v360_v34, %v359_v48 }
 0x107   :  { %v706_v24 = vpop.eup %705  ;;  %v362_v38 = vmul.f32 %v704_v35, %v975_v60 }
 0x108   :  { %633 = vst [vmem:[#allocation8 + $0x30] sm:$0xff] %v614_v49   ;;  %v361_v52 = vmul.f32 %v706_v24, %v977_v61 }
 0x10a   :  { %v619_v39 = vpack.c.bf16 %v362_v38, %v361_v52 }
 0x10c   :  { %634 = vst [vmem:[#allocation8 + $0x38] sm:$0xff] %v619_v39  }
 0x10d   :  { %784 = shalt.err (!%p781_p0)
}
 0x10e   :  { %s785_s27 = scalar_lea.hbm %s1055_s3, 1024 }
 0x10f   :  { %p786_p1 = scmp.ne.s32.totalorder %s1055_s3, %s785_s27  ;;  %p789_p2 = scmp.lt.u32.totalorder %s785_s27, %s1055_s3 }
 0x111   :  { %p791_p3 = pnand %p789_p2, %p786_p1 }
 0x113   :  { %794 = shalt.err (!%p791_p3)
}
 0x114   :  { %466 = dma.vmem_to_hbm [thread:$0]  %s461_s23, 1024, %s1055_s3, [#allocation9], %s808_s19, %s808_s19, %s809_s20  }
 0x115   :  { %799 = dma.done.wait [#allocation4], 1024  }
 0x116   :  { %800 = vsyncadd [#allocation4], 4294966272 }
 0x117   :  { %801 = dma.done.wait [#allocation9], 1024  }
 0x118   :  { %802 = vsyncadd [#allocation9], 4294966272 }
 0x119   :  { %473 = vsyncpa [#allocation3], 1 }
 0x11a   :  { %474 = vsyncpa [#allocation6], 1 }
 0x11b   :  { %475 = vsyncpa [#allocation4], 1 }
 0x11c   :  { %476 = vsyncpa [#allocation9], 1 }

</bundles_post_ra>
